<compile_context>
chip_gen: v7x
topology: tpu7x:2x2x1
jax: 0.10.0
libtpu: 0.0.40
codegen_flags: <defaults>
</compile_context>

<pallas_src>
import functools

import jax
import jax.numpy as jnp
from jax.experimental import pallas as pl
from jax.experimental.pallas import tpu as pltpu


def _round_up(x, m):
    return (x + m - 1) // m * m


def _pad2(a, rows, cols):
    return jnp.pad(a, ((0, rows - a.shape[0]), (0, cols - a.shape[1])))


# ---------------------------------------------------------------------------
# Kernel
# ---------------------------------------------------------------------------
def ffn_kernel(x_ref, w1_ref, b1_ref, wg1_ref, wg2_ref, ws3_ref, w2_ref, b2_ref,
               o_ref, *, gate_chunk):
    cdt = w1_ref.dtype                      # MXU operand dtype (bf16 by default)
    tm = x_ref.shape[0]
    dff2, dff = ws3_ref.shape               # padded gate width / padded d_ff

    # Cast activations in-kernel (VPU, hidden under the MXU); x arrives f32.
    x = x_ref[...].astype(cdt)

    # linear1: d_model -> d_ff (f32 accumulation, f32 bias added post-accum).
    h1 = jnp.dot(x, w1_ref[...], preferred_element_type=jnp.float32) + b1_ref[...]
    h1 = h1.astype(cdt)

    # swiGLU, blocked over the gate width: never materializes a (tm, 2*d_ff2)
    # f32 temp and interleaves MXU (matmuls) with EUP/VPU (silu, mul) per chunk.
    # Zero-padded gate columns / ws3 rows contribute exactly zero.
    h2 = jnp.zeros((tm, dff), jnp.float32)
    for c in range(0, dff2, gate_chunk):            # static, few iterations
        cs = min(gate_chunk, dff2 - c)
        g1 = jnp.dot(h1, wg1_ref[:, c:c + cs], preferred_element_type=jnp.float32)
        g2 = jnp.dot(h1, wg2_ref[:, c:c + cs], preferred_element_type=jnp.float32)
        gated = (jax.nn.silu(g1) * g2).astype(cdt)
        h2 = h2 + jnp.dot(gated, ws3_ref[c:c + cs, :],
                          preferred_element_type=jnp.float32)

    # TODO(synk): nn.Dropout is identity in eval mode; training-mode RNG masking
    # (pltpu.prng_random_bits) intentionally omitted.

    # linear2: d_ff -> d_model.
    out = jnp.dot(h2.astype(cdt), w2_ref[...],
                  preferred_element_type=jnp.float32) + b2_ref[...]
    o_ref[...] = out.astype(o_ref.dtype)


# ---------------------------------------------------------------------------
# One-time capability probe: single-buffered resident weights.
# ---------------------------------------------------------------------------
_SINGLE_BUFFER_OK = None


def _single_buffered_weights_supported():
    """Can a constant-index BlockSpec use pipeline_mode=pl.Buffered(1) here?

    A tiny probe kernel is compiled once and the result cached; this replaces a
    broad try/except around the real kernel (which would not fire under jit and
    could mask unrelated errors)."""
    global _SINGLE_BUFFER_OK
    if _SINGLE_BUFFER_OK is None:
        def probe(w_ref, o_ref):
            o_ref[...] = w_ref[...]

        try:
            out = pl.pallas_call(
                probe,
                out_shape=jax.ShapeDtypeStruct((16, 128), jnp.float32),
                grid=(2,),
                in_specs=[pl.BlockSpec((8, 128), lambda i: (0, 0),
                                       pipeline_mode=pl.Buffered(1))],
                out_specs=pl.BlockSpec((8, 128), lambda i: (i, 0)),
            )(jnp.zeros((8, 128), jnp.float32))
            jax.block_until_ready(out)
            _SINGLE_BUFFER_OK = True
        except Exception:
            _SINGLE_BUFFER_OK = False
    return _SINGLE_BUFFER_OK


# ---------------------------------------------------------------------------
# One-time weight prep (do NOT call per forward step).
# ---------------------------------------------------------------------------
def prepare_ffn_params(params, *, compute_dtype=jnp.bfloat16):
    """Zero-pad every feature dim to a lane-dense multiple of 128 and cast the
    MXU operands to compute_dtype (biases stay f32).  Call ONCE and cache the
    result in the param pytree -- this is a full HBM pass over the weights."""
    w1, b1, ws1, ws2, ws3, w2, b2 = params
    d_model, d_ff = w1.shape
    d_ff2 = ws1.shape[1]
    dm_p, dff_p, dff2_p = (_round_up(d, 128) for d in (d_model, d_ff, d_ff2))

    prepped = {
        "w1": _pad2(w1, dm_p, dff_p).astype(compute_dtype),
        "b1": _pad2(b1.reshape(1, d_ff), 1, dff_p).astype(jnp.float32),
        "wg1": _pad2(ws1, dff_p, dff2_p).astype(compute_dtype),
        "wg2": _pad2(ws2, dff_p, dff2_p).astype(compute_dtype),
        "ws3": _pad2(ws3, dff2_p, dff_p).astype(compute_dtype),
        "w2": _pad2(w2, dff_p, dm_p).astype(compute_dtype),
        "b2": _pad2(b2.reshape(1, d_model), 1, dm_p).astype(jnp.float32),
    }
    dims = {"d_model": d_model, "d_ff": d_ff, "d_ff2": d_ff2,
            "dm_p": dm_p, "dff_p": dff_p, "dff2_p": dff2_p}
    return prepped, dims


# ---------------------------------------------------------------------------
# Forward wrapper
# ---------------------------------------------------------------------------
def feed_forward_network(x, prepped, dims, *, tm=256, gate_chunk=512,
                         out_dtype=None):
    """x: (batch, seq, d_model) -> (batch, seq, d_model).

    tm: token row tile (256 matches v6e/v7x MXU; prefer 512 on v5e or when
        streaming weights).  gate_chunk: lane-dense silu/mul column chunk.
    out_dtype: pass jnp.bfloat16 to halve output writeback when the consumer
        accepts it (defaults to x.dtype).
    """
    batch, seq, d_model = x.shape
    assert d_model == dims["d_model"]
    dm_p, dff_p, dff2_p = dims["dm_p"], dims["dff_p"], dims["dff2_p"]

    n = batch * seq
    tm = _round_up(max(8, tm), 8)
    if n <= tm:
        # Shrink the tile so the parallel token grid has >= 2 steps where
        # possible (keeps both v7x TensorCores busy for small batches).
        tm = max(8, _round_up((n + 1) // 2, 8))
    n_p = _round_up(n, tm)

    # x stays in its original dtype (bf16 cast happens in-kernel) and is only
    # padded when the shapes actually require it.
    x2d = x.reshape(n, d_model)
    if n_p != n or dm_p != d_model:
        x2d = jnp.pad(x2d, ((0, n_p - n), (0, dm_p - d_model)))

    gate_chunk = min(_round_up(gate_chunk, 128), dff2_p)
    out_dtype = x.dtype if out_dtype is None else jnp.dtype(out_dtype)
    grid = (n_p // tm,)

    weights = (prepped["w1"], prepped["b1"], prepped["wg1"], prepped["wg2"],
               prepped["ws3"], prepped["w2"], prepped["b2"])

    # ----- cost hint (also documents the roofline) -----
    flops = 2 * n_p * (dm_p * dff_p + 2 * dff_p * dff2_p + dff2_p * dff_p
                       + dff_p * dm_p)
    w_bytes = sum(int(a.size) * a.dtype.itemsize for a in weights)
    bytes_accessed = (int(x2d.size) * x2d.dtype.itemsize + w_bytes
                      + n_p * dm_p * jnp.dtype(out_dtype).itemsize)
    cost = pl.CostEstimate(flops=int(flops), transcendentals=int(n_p * dff2_p),
                           bytes_accessed=int(bytes_accessed))

    # ----- VMEM budget, capped per generation (v7x has 64 MiB / TensorCore) -----
    single_buffered = _single_buffered_weights_supported()
    cbytes = prepped["w1"].dtype.itemsize
    io_bytes = 2 * tm * dm_p * (x2d.dtype.itemsize + jnp.dtype(out_dtype).itemsize)
    act_bytes = (4 * tm * (2 * dff_p + 3 * gate_chunk + dm_p)
                 + cbytes * tm * (dff_p + gate_chunk))
    vmem_est = (1 if single_buffered else 2) * w_bytes + io_bytes + act_bytes
    try:
        vmem_cap = int(pltpu.get_tpu_info().vmem_capacity_bytes)
    except Exception:
        vmem_cap = 64 * 1024 * 1024          # conservative: v7x per-TensorCore
    vmem_limit = int(min(max(int(1.5 * vmem_est), 32 * 1024 * 1024),
                         int(0.85 * vmem_cap)))

    wmode = pl.Buffered(1) if single_buffered else None

    def wspec(shape):   # resident weight: constant block index across the grid
        return pl.BlockSpec(shape, lambda i: (0, 0), pipeline_mode=wmode)

    # TODO(synk): at production widths on v7x, replace the resident wg1/wg2/ws3
    # specs with a second ("arbitrary") grid axis streaming d_ff2 blocks into an
    # f32 VMEM accumulator (pl.when init/finalize) and raise tm to >= 512.
    out2d = pl.pallas_call(
        functools.partial(ffn_kernel, gate_chunk=gate_chunk),
        out_shape=jax.ShapeDtypeStruct((n_p, dm_p), out_dtype),
        grid_spec=pltpu.PrefetchScalarGridSpec(
            num_scalar_prefetch=0,
            grid=grid,
            in_specs=[
                pl.BlockSpec((tm, dm_p), lambda i: (i, 0)),   # x row tile (f32)
                wspec((dm_p, dff_p)),                         # linear1 weight
                wspec((1, dff_p)),                            # linear1 bias (f32)
                wspec((dff_p, dff2_p)),                       # swiGLU w1
                wspec((dff_p, dff2_p)),                       # swiGLU w2
                wspec((dff2_p, dff_p)),                       # swiGLU w3
                wspec((dff_p, dm_p)),                         # linear2 weight
                wspec((1, dm_p)),                             # linear2 bias (f32)
            ],
            out_specs=pl.BlockSpec((tm, dm_p), lambda i: (i, 0)),
        ),
        compiler_params=pltpu.CompilerParams(
            dimension_semantics=("parallel",),
            vmem_limit_bytes=vmem_limit),
        cost_estimate=cost,
    )(x2d, *weights)

    return out2d[:n, :d_model].reshape(batch, seq, d_model)


# ---------------------------------------------------------------------------
# Parameter init + pure-JAX reference (matches the PyTorch module semantics)
# ---------------------------------------------------------------------------
def init_params(key, d_model, d_ff):
    """Weights stored as (d_in, d_out) == transpose of PyTorch nn.Linear.weight."""
    d_ff2 = int(d_ff * (8.0 / 3.0))     # swiGLU inner width (170 for d_ff=64)
    ks = jax.random.split(key, 7)

    def lin(k, din, dout):
        return jax.random.normal(k, (din, dout), jnp.float32) * (float(din) ** -0.5)

    w1 = lin(ks[0], d_model, d_ff)
    b1 = 0.02 * jax.random.normal(ks[1], (1, d_ff), jnp.float32)
    ws1 = lin(ks[2], d_ff, d_ff2)
    ws2 = lin(ks[3], d_ff, d_ff2)
    ws3 = lin(ks[4], d_ff2, d_ff)
    w2 = lin(ks[5], d_ff, d_model)
    b2 = 0.02 * jax.random.normal(ks[6], (1, d_model), jnp.float32)
    return (w1, b1, ws1, ws2, ws3, w2, b2)


def reference_ffn(x, params):
    w1, b1, ws1, ws2, ws3, w2, b2 = params
    h1 = x @ w1 + b1
    g = jax.nn.silu(h1 @ ws1) * (h1 @ ws2)
    h2 = g @ ws3
    return h2 @ w2 + b2


if __name__ == "__main__":
    key = jax.random.PRNGKey(0)
    d_model, d_ff = 32, 64
    batch, seq = 2, 8

    k_x, k_p = jax.random.split(key)
    x = jax.random.normal(k_x, (batch, seq, d_model), jnp.float32)
    params = init_params(k_p, d_model, d_ff)

    # One-time weight prep (pad + bf16 cast), cached outside the hot path.
    prepped, dims = prepare_ffn_params(params)
    prepped = {k: jax.block_until_ready(v) for k, v in prepped.items()}

    out = feed_forward_network(x, prepped, dims)   # bf16 MXU ops, f32 accumulation
    out = jax.block_until_ready(out)

    ref = reference_ffn(x, params)                 # pure-f32 reference
    assert out.shape == (batch, seq, d_model)
    # bf16 operands -> loosened tolerance (near-exact f32 parity is available by
    # calling prepare_ffn_params(..., compute_dtype=jnp.float32)).
    assert jnp.allclose(out, ref, atol=5e-2, rtol=5e-2), (
        f"mismatch vs. JAX reference, max abs err {jnp.max(jnp.abs(out - ref))}")

    print("KERNEL_OK")
</pallas_src>

<mosaic_0001>
module attributes {stable_mosaic.version = 11 : i64} {
  func.func @probe(%arg0: i32, %arg1: memref<8x128xf32, #tpu.memory_space<vmem>>, %arg2: memref<8x128xf32, #tpu.memory_space<vmem>>) attributes {dimension_semantics = [#tpu.dimension_semantics<arbitrary>], iteration_bounds = array<i64: 2>, scalar_prefetch = 0 : i64, scratch_operands = 0 : i64, tpu.core_type = #tpu.core_type<tc>, window_params = [{pipeline_mode = #tpu.pipeline_mode<synchronous>, transform_indices = @transform_0, window_bounds = array<i64: 8, 128>}, {transform_indices = @transform_1, window_bounds = array<i64: 8, 128>}]} {
    %c0 = arith.constant 0 : index
    %c0_0 = arith.constant 0 : index
    %0 = vector.load %arg1[%c0, %c0_0] : memref<8x128xf32, #tpu.memory_space<vmem>>, vector<8x128xf32>
    %c0_1 = arith.constant 0 : index
    %c0_2 = arith.constant 0 : index
    %1 = vector.load %arg2[%c0_1, %c0_2] : memref<8x128xf32, #tpu.memory_space<vmem>>, vector<8x128xf32>
    tpu.vector_store %arg2[%c0_1, %c0_2], %0 {strides = array<i32>} : memref<8x128xf32, #tpu.memory_space<vmem>>, vector<8x128xf32>,
    return
  }
  func.func @transform_0(%arg0: i32) -> (i32, i32) {
    %c0_i32 = arith.constant 0 : i32
    %c0_i32_0 = arith.constant 0 : i32
    %c0_i32_1 = arith.constant 0 : i32
    return %c0_i32, %c0_i32_0 : i32, i32
  }
  func.func @transform_1(%arg0: i32) -> (i32, i32) {
    %c0_i32 = arith.constant 0 : i32
    %c0_i32_0 = arith.constant 0 : i32
    return %arg0, %c0_i32 : i32, i32
  }
}

module attributes {stable_mosaic.version = 11 : i64} {
  func.func @ffn_kernel(%arg0: i32, %arg1: memref<8x128xf32, #tpu.memory_space<vmem>>, %arg2: memref<128x128xbf16, #tpu.memory_space<vmem>>, %arg3: memref<1x128xf32, #tpu.memory_space<vmem>>, %arg4: memref<128x256xbf16, #tpu.memory_space<vmem>>, %arg5: memref<128x256xbf16, #tpu.memory_space<vmem>>, %arg6: memref<256x128xbf16, #tpu.memory_space<vmem>>, %arg7: memref<128x128xbf16, #tpu.memory_space<vmem>>, %arg8: memref<1x128xf32, #tpu.memory_space<vmem>>, %arg9: memref<8x128xf32, #tpu.memory_space<vmem>>) attributes {dimension_semantics = [#tpu.dimension_semantics<parallel>], iteration_bounds = array<i64: 2>, scalar_prefetch = 0 : i64, scratch_operands = 0 : i64, tpu.core_type = #tpu.core_type<tc>, window_params = [{transform_indices = @transform_0, window_bounds = array<i64: 8, 128>}, {pipeline_mode = #tpu.pipeline_mode<synchronous>, transform_indices = @transform_1, window_bounds = array<i64: 128, 128>}, {pipeline_mode = #tpu.pipeline_mode<synchronous>, transform_indices = @transform_2, window_bounds = array<i64: 1, 128>}, {pipeline_mode = #tpu.pipeline_mode<synchronous>, transform_indices = @transform_3, window_bounds = array<i64: 128, 256>}, {pipeline_mode = #tpu.pipeline_mode<synchronous>, transform_indices = @transform_4, window_bounds = array<i64: 128, 256>}, {pipeline_mode = #tpu.pipeline_mode<synchronous>, transform_indices = @transform_5, window_bounds = array<i64: 256, 128>}, {pipeline_mode = #tpu.pipeline_mode<synchronous>, transform_indices = @transform_6, window_bounds = array<i64: 128, 128>}, {pipeline_mode = #tpu.pipeline_mode<synchronous>, transform_indices = @transform_7, window_bounds = array<i64: 1, 128>}, {transform_indices = @transform_8, window_bounds = array<i64: 8, 128>}]} {
    %c0 = arith.constant 0 : index
    %c0_0 = arith.constant 0 : index
    %0 = vector.load %arg1[%c0, %c0_0] : memref<8x128xf32, #tpu.memory_space<vmem>>, vector<8x128xf32>
    %1 = arith.truncf %0 : vector<8x128xf32> to vector<8x128xbf16>
    %c0_1 = arith.constant 0 : index
    %c0_2 = arith.constant 0 : index
    %2 = vector.load %arg2[%c0_1, %c0_2] : memref<128x128xbf16, #tpu.memory_space<vmem>>, vector<128x128xbf16>
    %cst = arith.constant dense<0.000000e+00> : vector<8x128xf32>
    %3 = tpu.matmul %1, %2, %cst {dimension_numbers = #tpu.dot_dimension_numbers<[1], [0], [0], [1], [0, 0, 1, 1], [], []>} : vector<8x128xbf16>, vector<128x128xbf16>, vector<8x128xf32> -> vector<8x128xf32>
    %c0_3 = arith.constant 0 : index
    %c0_4 = arith.constant 0 : index
    %4 = vector.load %arg3[%c0_3, %c0_4] : memref<1x128xf32, #tpu.memory_space<vmem>>, vector<1x128xf32>
    %5 = vector.broadcast %4 : vector<1x128xf32> to vector<8x128xf32>
    %6 = arith.addf %3, %5 : vector<8x128xf32>
    %7 = arith.truncf %6 : vector<8x128xf32> to vector<8x128xbf16>
    %cst_5 = arith.constant 0.000000e+00 : f32
    %8 = vector.broadcast %cst_5 : f32 to vector<8x128xf32>
    %c0_6 = arith.constant 0 : index
    %c0_7 = arith.constant 0 : index
    %9 = vector.load %arg4[%c0_6, %c0_7] : memref<128x256xbf16, #tpu.memory_space<vmem>>, vector<128x256xbf16>
    %cst_8 = arith.constant dense<0.000000e+00> : vector<8x256xf32>
    %10 = tpu.matmul %7, %9, %cst_8 {dimension_numbers = #tpu.dot_dimension_numbers<[1], [0], [0], [1], [0, 0, 1, 1], [], []>} : vector<8x128xbf16>, vector<128x256xbf16>, vector<8x256xf32> -> vector<8x256xf32>
    %c0_9 = arith.constant 0 : index
    %c0_10 = arith.constant 0 : index
    %11 = vector.load %arg5[%c0_9, %c0_10] : memref<128x256xbf16, #tpu.memory_space<vmem>>, vector<128x256xbf16>
    %cst_11 = arith.constant dense<0.000000e+00> : vector<8x256xf32>
    %12 = tpu.matmul %7, %11, %cst_11 {dimension_numbers = #tpu.dot_dimension_numbers<[1], [0], [0], [1], [0, 0, 1, 1], [], []>} : vector<8x128xbf16>, vector<128x256xbf16>, vector<8x256xf32> -> vector<8x256xf32>
    %13 = arith.negf %10 : vector<8x256xf32>
    %14 = math.exp %13 : vector<8x256xf32>
    %cst_12 = arith.constant 1.000000e+00 : f32
    %15 = vector.broadcast %cst_12 : f32 to vector<8x256xf32>
    %16 = arith.addf %15, %14 : vector<8x256xf32>
    %17 = arith.divf %15, %16 : vector<8x256xf32>
    %18 = arith.mulf %10, %17 : vector<8x256xf32>
    %19 = arith.mulf %18, %12 : vector<8x256xf32>
    %20 = arith.truncf %19 : vector<8x256xf32> to vector<8x256xbf16>
    %c0_13 = arith.constant 0 : index
    %c0_14 = arith.constant 0 : index
    %21 = vector.load %arg6[%c0_13, %c0_14] : memref<256x128xbf16, #tpu.memory_space<vmem>>, vector<256x128xbf16>
    %cst_15 = arith.constant dense<0.000000e+00> : vector<8x128xf32>
    %22 = tpu.matmul %20, %21, %cst_15 {dimension_numbers = #tpu.dot_dimension_numbers<[1], [0], [0], [1], [0, 0, 1, 1], [], []>} : vector<8x256xbf16>, vector<256x128xbf16>, vector<8x128xf32> -> vector<8x128xf32>
    %23 = arith.addf %8, %22 : vector<8x128xf32>
    %24 = arith.truncf %23 : vector<8x128xf32> to vector<8x128xbf16>
    %c0_16 = arith.constant 0 : index
    %c0_17 = arith.constant 0 : index
    %25 = vector.load %arg7[%c0_16, %c0_17] : memref<128x128xbf16, #tpu.memory_space<vmem>>, vector<128x128xbf16>
    %cst_18 = arith.constant dense<0.000000e+00> : vector<8x128xf32>
    %26 = tpu.matmul %24, %25, %cst_18 {dimension_numbers = #tpu.dot_dimension_numbers<[1], [0], [0], [1], [0, 0, 1, 1], [], []>} : vector<8x128xbf16>, vector<128x128xbf16>, vector<8x128xf32> -> vector<8x128xf32>
    %c0_19 = arith.constant 0 : index
    %c0_20 = arith.constant 0 : index
    %27 = vector.load %arg8[%c0_19, %c0_20] : memref<1x128xf32, #tpu.memory_space<vmem>>, vector<1x128xf32>
    %28 = vector.broadcast %27 : vector<1x128xf32> to vector<8x128xf32>
    %29 = arith.addf %26, %28 : vector<8x128xf32>
    %c0_21 = arith.constant 0 : index
    %c0_22 = arith.constant 0 : index
    %30 = vector.load %arg9[%c0_21, %c0_22] : memref<8x128xf32, #tpu.memory_space<vmem>>, vector<8x128xf32>
    tpu.vector_store %arg9[%c0_21, %c0_22], %29 {strides = array<i32>} : memref<8x128xf32, #tpu.memory_space<vmem>>, vector<8x128xf32>,
    return
  }
  func.func @transform_0(%arg0: i32) -> (i32, i32) {
    %c0_i32 = arith.constant 0 : i32
    %c0_i32_0 = arith.constant 0 : i32
    return %arg0, %c0_i32 : i32, i32
  }
  func.func @transform_1(%arg0: i32) -> (i32, i32) {
    %c0_i32 = arith.constant 0 : i32
    %c0_i32_0 = arith.constant 0 : i32
    %c0_i32_1 = arith.constant 0 : i32
    return %c0_i32, %c0_i32_0 : i32, i32
  }
  func.func @transform_2(%arg0: i32) -> (i32, i32) {
    %c0_i32 = arith.constant 0 : i32
    %c0_i32_0 = arith.constant 0 : i32
    %c0_i32_1 = arith.constant 0 : i32
    return %c0_i32, %c0_i32_0 : i32, i32
  }
  func.func @transform_3(%arg0: i32) -> (i32, i32) {
    %c0_i32 = arith.constant 0 : i32
    %c0_i32_0 = arith.constant 0 : i32
    %c0_i32_1 = arith.constant 0 : i32
    return %c0_i32, %c0_i32_0 : i32, i32
  }
  func.func @transform_4(%arg0: i32) -> (i32, i32) {
    %c0_i32 = arith.constant 0 : i32
    %c0_i32_0 = arith.constant 0 : i32
    %c0_i32_1 = arith.constant 0 : i32
    return %c0_i32, %c0_i32_0 : i32, i32
  }
  func.func @transform_5(%arg0: i32) -> (i32, i32) {
    %c0_i32 = arith.constant 0 : i32
    %c0_i32_0 = arith.constant 0 : i32
    %c0_i32_1 = arith.constant 0 : i32
    return %c0_i32, %c0_i32_0 : i32, i32
  }
  func.func @transform_6(%arg0: i32) -> (i32, i32) {
    %c0_i32 = arith.constant 0 : i32
    %c0_i32_0 = arith.constant 0 : i32
    %c0_i32_1 = arith.constant 0 : i32
    return %c0_i32, %c0_i32_0 : i32, i32
  }
  func.func @transform_7(%arg0: i32) -> (i32, i32) {
    %c0_i32 = arith.constant 0 : i32
    %c0_i32_0 = arith.constant 0 : i32
    %c0_i32_1 = arith.constant 0 : i32
    return %c0_i32, %c0_i32_0 : i32, i32
  }
  func.func @transform_8(%arg0: i32) -> (i32, i32) {
    %c0_i32 = arith.constant 0 : i32
    %c0_i32_0 = arith.constant 0 : i32
    return %arg0, %c0_i32 : i32, i32
  }
}

</mosaic_0001>

<bundles_post_ra>
// kernel: tpu_custom_call.1
= control target key start
LH: loop header
LB: loop body
LE: loop exit
PB: predicated region body
PF: predicated region fallthrough
CT: control target
= control target key end

     0   :  { %6 = vsyncpa [#allocation3], 0  ;;  %s481_s0 = inlined_call_operand.hbm [shape: f32[8,128], index: 0, kind: input, shape index: {}]   ;;  %s482_s1 = inlined_call_operand.hbm [shape: f32[16,128], index: 1, kind: output, shape index: {}]  }
   0x1   :  { %7 = vsyncpa [#allocation4], 0 }
   0x2   :  { %9 = vsyncpa [#allocation4 + $0x1], 0  ;;  %s351_s6 = smov 0   ;;  %s353_s7 = smov 0  }
   0x3   :  { %s355_s8 = smov 0   ;;  %s357_s9 = smov 0  }
   0x4 LB: > { %s372_s10 = sadd.s32 4294967295, %s337_s9   ;;  %s183_s11 = sadd.s32 4294967294, %s337_s9   ;;  %s337_s9 = sphi %s357_s9, %s498_s9   ;;  %s333_s8 = sphi %s355_s8, %s497_s8   ;;  %s329_s7 = sphi %s353_s7, %s496_s7   ;;  %s325_s6 = sphi %s351_s6, %s495_s6  }
   0x5   : > { %s376_s12 = sadd.s32 1, %s337_s9   ;;  %s43_s13 = sadd.s32 1, %s333_s8 }
   0x6   : > { %s40_s14 = ssub.s32 %s337_s9, %s376_s12  ;;  %p53_p0 = scmp.ne.s32.totalorder %s333_s8, %s329_s7 }
   0x7   : > { %p41_p1 = scmp.eq.s32.totalorder %s40_s14, 0  ;;  %p54_p2 = scmp.eq.s32.totalorder %s372_s10, 1 }
   0x8   : > { %p59_p3 = scmp.ne.s32.totalorder %s329_s7, %s325_s6  ;;  %p60_p4 = scmp.eq.s32.totalorder %s183_s11, 1 }
   0x9   : > { %s387_s15 = scalar_select %p41_p1, %s333_s8, %s43_s13  }
   0xa   : > { %p389_p5 = por %p54_p2, %p53_p0  ;;  %p393_p6 = por %p60_p4, %p59_p3 }
   0xb   : > { %p184_p7 = scmp.ge.s32.totalorder %s337_s9, 1  ;;  %p67_p8 = scmp.lt.s32.totalorder %s337_s9, 3 }
   0xc   : > { %s486_s16 = scalar_select %p389_p5, 1, 0 }
   0xd   : > { %s487_s17 = scalar_select %p393_p6, 1, 0 }
   0xe   : > { %p483_p9 = scmp.eq.s32.totalorder %s372_s10, 0  ;;  %p400_p10 = pnand %p184_p7, %p67_p8 }
   0xf   : > { %s339_s19 = smov [#allocation2]   ;;  %s243_s24 = scalar_lea.hbm %s481_s0, 128 }
  0x10   : > { %s488_s18 = scalar_select %p400_p10, 1, 0 }
  0x11   : > { %s80_s20 = sshll.u32 %s339_s19, 4  ;;  %p199_p11 = pneg %p400_p10  ;;  %s81_s20 = int_to_ptr.vmem [resolvable:$true] %s80_s20 }
  0x12   : > { %p244_p13 = scmp.ne.s32.totalorder %s481_s0, %s243_s24  ;;  %p250_p3 = scmp.lt.u32.totalorder %s243_s24, %s481_s0 }
  0x13   : > { %p408_p12 = pnand %p483_p9, %p199_p11 }
  0x15   : > { %p245_p0 = pneg %p408_p12 }
  0x17   : > { %p246_p1 = pnand %p245_p0, %p244_p13 }
  0x19   : > { %p247_p2 = pneg %p246_p1 }
  0x1b   : > { %p252_p4 = pnand %p250_p3, %p247_p2 }
  0x1d   : > { %255 = shalt.err (!%p252_p4)
}
  0x1e   : > { %s256_s29 = scalar_lea.vmem %s81_s20, 128  ;;  %p264_p9 = scmp.lt.s32.totalorder %s81_s20, %s81_s20 }
  0x1f   : > { %p257_p7 = scmp.ne.s32.totalorder %s81_s20, %s256_s29  ;;  %p265_p6 = scmp.lt.s32.totalorder %s256_s29, %s256_s29 }
  0x21   : > { %p259_p8 = pnand %p257_p7, %p245_p0  ;;  %p266_p5 = por %p265_p6, %p264_p9 }
  0x23   : > { %p260_p11 = pneg %p259_p8 }
  0x25   : > { %p267_p10 = pnand %p266_p5, %p260_p11 }
  0x27   : > { %270 = shalt.err (!%p267_p10)
}
  0x28   : > { %202 = dma.hbm_to_vmem [thread:$0]  (!%p408_p12), %s481_s0, 128, %s81_s20, [#allocation3]  }
  0x29   : > { %p490_p13 = scmp.ne.s32.totalorder %s488_s18, 0 }
  0x2a   : > { %p491_p1 = scmp.eq.s32.totalorder (!%p490_p13), %s372_s10, 0 }
  0x2b   : > { %93 = sbr.rel (%p490_p13) target bundleno = 77 (0x4d), region = 24 }
  0x32   : > { %316 = dma.done.wait (%p491_p1), [#allocation3], 128   ;;  %p492_p0 = pmov %p491_p1 }
  0x33   : > { %s105_s3 = sand.u32 1, %s329_s7   ;;  %s190_s13 = sshll.u32 %s372_s10, 7  ;;  %v108_v0 = vld [vmem:[#allocation2] sm:$0xff] }
  0x34   : > { %318 = vsyncadd (%p492_p0), [#allocation3], 4294967168  ;;  %s188_s4 = sshll.u32 %s105_s3, 3  ;;  %s441_s18 = scalar_lea.hbm %s482_s1, %s190_s13 }
  0x35   : > { %s107_s5 = scalar_lea.vmem [#allocation5], %s188_s4  ;;  %s111_s20 = scalar_lea.sflag [#allocation4], %s105_s3 }
  0x36   : > { %s124_s11 = sshll.u32 %s107_s5, 4  ;;  %109 = vst [vmem:[%s107_s5] sm:$0xff] %v108_v0  ;;  %p493_p6 = scmp.ne.s32.totalorder %s486_s16, 0  ;;  %s436_s11 = int_to_ptr.vmem [resolvable:$true] %s124_s11 }
  0x37   : > { %s271_s21 = scalar_lea.vmem %s436_s11, 128  ;;  %s340_s22 = smov [#allocation5]  }
  0x38   : > { %p272_p5 = scmp.ne.s32.totalorder %s436_s11, %s271_s21  ;;  %s275_s10 = sshll.u32 %s340_s22, 4  ;;  %s276_s10 = int_to_ptr.vmem [resolvable:$false] %s275_s10 }
  0x39   : > { %s277_s23 = scalar_lea.vmem %s276_s10, 256  ;;  %p278_p12 = scmp.lt.s32.totalorder %s436_s11, %s276_s10 }
  0x3a   : > { %p273_p9 = pnand %p272_p5, %p493_p6  ;;  %p279_p2 = scmp.lt.s32.totalorder %s277_s23, %s271_s21 }
  0x3c   : > { %p274_p10 = pneg %p273_p9  ;;  %p280_p3 = por %p279_p2, %p278_p12 }
  0x3e   : > { %p281_p4 = pnand %p280_p3, %p274_p10 }
  0x40   : > { %284 = shalt.err (!%p281_p4)
}
  0x41   : > { %s285_s24 = scalar_lea.hbm %s441_s18, 128  ;;  %s289_s27 = scalar_lea.hbm %s482_s1, 256 }
  0x42   : > { %p286_p7 = scmp.ne.s32.totalorder %s441_s18, %s285_s24  ;;  %p290_p13 = scmp.lt.u32.totalorder %s441_s18, %s482_s1 }
  0x43   : > { %p291_p1 = scmp.lt.u32.totalorder %s289_s27, %s285_s24  ;;  %p293_p5 = scmp.lt.u32.totalorder %s285_s24, %s441_s18 }
  0x44   : > { %p287_p8 = pnand %p286_p7, %p493_p6 }
  0x45   : > { %p292_p0 = por %p291_p1, %p290_p13 }
  0x46   : > { %p288_p11 = pneg %p287_p8 }
  0x47   : > { %p294_p9 = por %p293_p5, %p292_p0 }
  0x49   : > { %p295_p10 = pnand %p294_p9, %p288_p11 }
  0x4b   : > { %298 = shalt.err (!%p295_p10)
}
  0x4c   : > { %197 = dma.vmem_to_hbm [thread:$0]  (%p493_p6), %s436_s11, 128, %s441_s18, %s111_s20  }
  0x4d PF: > { %p209_p12 = scmp.ge.s32.totalorder %s337_s9, 2  ;;  %s136_s30 = sand.u32 1, %s325_s6  }
  0x4e   : > { %p494_p2 = scmp.ne.s32.totalorder %s487_s17, 0  ;;  %s137_s2 = scalar_lea.sflag [#allocation4], %s136_s30 }
  0x50   : > { %p204_p3 = pnand %p209_p12, %p494_p2 }
  0x52   : > { %320 = dma.done.wait (!%p204_p3), %s137_s2, 128  }
  0x53   : > { %322 = vsyncadd (!%p204_p3), %s137_s2, 4294967168  ;;  %p12_p4 = scmp.ge.s32.totalorder %s376_s12, 4   ;;  %s495_s6 = smov %s329_s7 }
  0x54   : > { %s496_s7 = smov %s333_s8  ;;  %s497_s8 = smov %s387_s15 }
  0x55   : > { %s498_s9 = smov %s376_s12  ;;  %14 = sbr.rel (!%p12_p4) target bundleno = 4 (0x4), region = 61 }
  0x5c   :  { %142 = vsyncpa [#allocation3], 1 }
  0x5d   :  { %144 = vsyncpa [#allocation3 + $0x1], 1 }
  0x5e   :  { %145 = vsyncpa [#allocation4], 1 }
  0x5f   :  { %147 = vsyncpa [#allocation4 + $0x1], 1 }

// kernel: tpu_custom_call.1
= control target key start
LH: loop header
LB: loop body
LE: loop exit
PB: predicated region body
PF: predicated region fallthrough
CT: control target
= control target key end

     0   :  { %s2219_s0 = inlined_call_operand.hbm [shape: f32[16,128], index: 0, kind: input, shape index: {}]   ;;  %s2220_s1 = inlined_call_operand.hbm [shape: bf16[128,128], index: 1, kind: input, shape index: {}]   ;;  %s2221_s2 = inlined_call_operand.vmem [shape: f32[1,128], index: 2, kind: input, shape index: {}]   ;;  %s2222_s3 = inlined_call_operand.hbm [shape: bf16[128,256], index: 3, kind: input, shape index: {}]   ;;  %s2223_s4 = inlined_call_operand.hbm [shape: bf16[128,256], index: 4, kind: input, shape index: {}]   ;;  %s2224_s5 = inlined_call_operand.hbm [shape: bf16[256,128], index: 5, kind: input, shape index: {}]   ;;  %s2225_s6 = inlined_call_operand.hbm [shape: bf16[128,128], index: 6, kind: input, shape index: {}]   ;;  %s2226_s7 = inlined_call_operand.vmem [shape: f32[1,128], index: 7, kind: input, shape index: {}]   ;;  %s2227_s8 = inlined_call_operand.hbm [shape: f32[16,128], index: 8, kind: output, shape index: {}]  }
   0x1   :  { %2235 = sst [smem:[#allocation19_spill]] %s2220_s1 }
   0x2   :  { %13 = vsyncpa [#allocation3], 0 }
   0x3   :  { %15 = vsyncpa [#allocation3 + $0x1], 0 }
   0x4   :  { %16 = vsyncpa [#allocation6], 0 }
   0x5   :  { %17 = vsyncpa [#allocation9], 0 }
   0x6   :  { %18 = vsyncpa [#allocation12], 0 }
   0x7   :  { %19 = vsyncpa [#allocation4], 0 }
   0x8   :  { %21 = vsyncpa [#allocation4 + $0x1], 0  ;;  %s1885_s27 = smov 0   ;;  %s1887_s28 = smov 0  }
   0x9   :  { %s1889_s29 = smov 0   ;;  %s1891_s30 = smov 0  }
   0xa LB: > { %s1826_s9 = smov [#allocation5]   ;;  %s1906_s11 = sadd.s32 4294967295, %s1824_s30   ;;  %s1824_s30 = sphi %s1891_s30, %s2260_s30   ;;  %s1820_s29 = sphi %s1889_s29, %s2259_s29   ;;  %s1816_s28 = sphi %s1887_s28, %s2258_s28   ;;  %s1812_s27 = sphi %s1885_s27, %s2257_s27  }
   0xb   : > { %s243_s10 = sshll.u32 %s1826_s9, 4  ;;  %p1215_p0 = scmp.ge.s32.totalorder %s1824_s30, 1  ;;  %s1911_s10 = int_to_ptr.vmem [resolvable:$true] %s243_s10 }
   0xc   : > { %p2230_p1 = scmp.eq.s32.totalorder %s1906_s11, 0  ;;  %p231_p2 = scmp.lt.s32.totalorder %s1824_s30, 3 }
   0xd   : > { %s1827_s14 = smov [#allocation8]   ;;  %s1828_s16 = smov [#allocation7]  }
   0xe   : > { %p1913_p3 = pnand %p1215_p0, %p231_p2  ;;  %s272_s15 = sshll.u32 %s1827_s14, 4  ;;  %s1926_s15 = int_to_ptr.vmem [resolvable:$true] %s272_s15 }
   0xf   : > { %s1928_s17 = sshll.u32 %s1828_s16, 4  ;;  %s2238_s1 = sld [smem:[#allocation19_spill]]  ;;  %s260_s17 = int_to_ptr.vmem [resolvable:$true] %s1928_s17 }
  0x10   : > { %s2236_s12 = scalar_select %p1913_p3, 1, 0 }
  0x11   : > { %p1408_p5 = pneg %p1913_p3 }
  0x13   : > { %p1922_p6 = pnand %p1408_p5, %p2230_p1 }
  0x15   : > { %s1576_s20 = scalar_lea.hbm %s2238_s1, 1024  ;;  %p1938_p8 = pneg %p1922_p6 }
  0x16   : > { %p1577_p7 = scmp.ne.s32.totalorder %s2238_s1, %s1576_s20  ;;  %p1583_p11 = scmp.lt.u32.totalorder %s1576_s20, %s2238_s1 }
  0x18   : > { %p1579_p9 = pnand %p1938_p8, %p1577_p7 }
  0x1a   : > { %p1580_p10 = pneg %p1579_p9 }
  0x1c   : > { %p1585_p12 = pnand %p1583_p11, %p1580_p10 }
  0x1e   : > { %1588 = shalt.err (!%p1585_p12)
}
  0x1f   : > { %s1589_s26 = scalar_lea.vmem %s1911_s10, 1024  ;;  %p1597_p5 = scmp.lt.s32.totalorder %s1911_s10, %s1911_s10 }
  0x20   : > { %p1590_p13 = scmp.ne.s32.totalorder %s1911_s10, %s1589_s26  ;;  %p1598_p4 = scmp.lt.s32.totalorder %s1589_s26, %s1589_s26 }
  0x22   : > { %p1592_p0 = pnand %p1590_p13, %p1938_p8  ;;  %p1599_p7 = por %p1598_p4, %p1597_p5 }
  0x24   : > { %p1593_p2 = pneg %p1592_p0 }
  0x26   : > { %p1600_p9 = pnand %p1599_p7, %p1593_p2 }
  0x28   : > { %1603 = shalt.err (!%p1600_p9)
}
  0x29   : > { %s2228_s9 = smov 64   ;;  %s2232_s14 = smov 4  }
  0x2a   : > { %1411 = dma.hbm_to_vmem [thread:$0]  (!%p1922_p6), %s2238_s1, 1024, %s1911_s10, [#allocation6], %s2228_s9, %s2228_s9, %s2232_s14  }
  0x2b   : > { %s1604_s21 = scalar_lea.hbm %s2223_s4, 2048 }
  0x2c   : > { %p1605_p4 = scmp.ne.s32.totalorder %s2223_s4, %s1604_s21  ;;  %p1611_p12 = scmp.lt.u32.totalorder %s1604_s21, %s2223_s4 }
  0x2e   : > { %p1607_p10 = pnand %p1605_p4, %p1938_p8 }
  0x30   : > { %p1608_p11 = pneg %p1607_p10 }
  0x32   : > { %p1613_p13 = pnand %p1611_p12, %p1608_p11 }
  0x34   : > { %1616 = shalt.err (!%p1613_p13)
}
  0x35   : > { %s1617_s10 = scalar_lea.vmem %s1926_s15, 2048  ;;  %p1625_p7 = scmp.lt.s32.totalorder %s1926_s15, %s1926_s15 }
  0x36   : > { %p1618_p0 = scmp.ne.s32.totalorder %s1926_s15, %s1617_s10  ;;  %p1626_p9 = scmp.lt.s32.totalorder %s1617_s10, %s1617_s10 }
  0x38   : > { %p1620_p2 = pnand %p1618_p0, %p1938_p8  ;;  %p1627_p4 = por %p1626_p9, %p1625_p7 }
  0x3a   : > { %p1621_p5 = pneg %p1620_p2 }
  0x3c   : > { %p1628_p10 = pnand %p1627_p4, %p1621_p5 }
  0x3e   : > { %1631 = shalt.err (!%p1628_p10)
}
  0x3f   : > { %s1831_s16 = smov 128   ;;  %s1832_s18 = smov 8  }
  0x40   : > { %1417 = dma.hbm_to_vmem [thread:$0]  (!%p1922_p6), %s2223_s4, 2048, %s1926_s15, [#allocation9], %s1831_s16, %s1831_s16, %s1832_s18  }
  0x41   : > { %s1632_s24 = scalar_lea.hbm %s2222_s3, 2048 }
  0x42   : > { %p1633_p11 = scmp.ne.s32.totalorder %s2222_s3, %s1632_s24  ;;  %p1639_p0 = scmp.lt.u32.totalorder %s1632_s24, %s2222_s3 }
  0x44   : > { %p1635_p12 = pnand %p1633_p11, %p1938_p8 }
  0x46   : > { %p1636_p13 = pneg %p1635_p12 }
  0x48   : > { %p1641_p2 = pnand %p1639_p0, %p1636_p13 }
  0x4a   : > { %1644 = shalt.err (!%p1641_p2)
}
  0x4b   : > { %s1645_s19 = scalar_lea.vmem %s260_s17, 2048  ;;  %p1653_p4 = scmp.lt.s32.totalorder %s260_s17, %s260_s17 }
  0x4c   : > { %p1646_p5 = scmp.ne.s32.totalorder %s260_s17, %s1645_s19  ;;  %p1654_p10 = scmp.lt.s32.totalorder %s1645_s19, %s1645_s19 }
  0x4e   : > { %p1648_p7 = pnand %p1646_p5, %p1938_p8  ;;  %p1655_p1 = por %p1654_p10, %p1653_p4 }
  0x50   : > { %p1649_p9 = pneg %p1648_p7 }
  0x52   : > { %p1656_p3 = pnand %p1655_p1, %p1649_p9 }
  0x54   : > { %1659 = shalt.err (!%p1656_p3)
}
  0x55   : > { %1414 = dma.hbm_to_vmem [thread:$0]  (!%p1922_p6), %s2222_s3, 2048, %s260_s17, [#allocation6], %s1831_s16, %s1831_s16, %s1832_s18  }
  0x56   : > { %s1833_s9 = smov [#allocation10]   ;;  %s1834_s22 = smov [#allocation11]  }
  0x57   : > { %s285_s21 = sshll.u32 %s1833_s9, 4  ;;  %s298_s24 = sshll.u32 %s1834_s22, 4  ;;  %s286_s21 = int_to_ptr.vmem [resolvable:$true] %s285_s21  ;;  %s299_s24 = int_to_ptr.vmem [resolvable:$true] %s298_s24 }
  0x58   : > { %s1660_s10 = scalar_lea.hbm %s2224_s5, 2048 }
  0x59   : > { %p1661_p1 = scmp.ne.s32.totalorder %s2224_s5, %s1660_s10  ;;  %p1667_p12 = scmp.lt.u32.totalorder %s1660_s10, %s2224_s5 }
  0x5b   : > { %p1663_p3 = pnand %p1661_p1, %p1938_p8 }
  0x5d   : > { %p1664_p11 = pneg %p1663_p3 }
  0x5f   : > { %p1669_p13 = pnand %p1667_p12, %p1664_p11 }
  0x61   : > { %1672 = shalt.err (!%p1669_p13)
}
  0x62   : > { %s1673_s17 = scalar_lea.vmem %s286_s21, 2048  ;;  %p1681_p7 = scmp.lt.s32.totalorder %s286_s21, %s286_s21 }
  0x63   : > { %p1674_p0 = scmp.ne.s32.totalorder %s286_s21, %s1673_s17  ;;  %p1682_p9 = scmp.lt.s32.totalorder %s1673_s17, %s1673_s17 }
  0x65   : > { %p1676_p2 = pnand %p1674_p0, %p1938_p8  ;;  %p1683_p4 = por %p1682_p9, %p1681_p7 }
  0x67   : > { %p1677_p5 = pneg %p1676_p2 }
  0x69   : > { %p1684_p10 = pnand %p1683_p4, %p1677_p5 }
  0x6b   : > { %1687 = shalt.err (!%p1684_p10)
}
  0x6c   : > { %s2240_s14 = smov 4   ;;  %s2241_s16 = smov 64  }
  0x6d   : > { %1420 = dma.hbm_to_vmem [thread:$0]  (!%p1922_p6), %s2224_s5, 2048, %s286_s21, [#allocation9], %s2241_s16, %s2241_s16, %s2240_s14  }
  0x6e   : > { %s1688_s22 = scalar_lea.hbm %s2225_s6, 1024 }
  0x6f   : > { %p1689_p1 = scmp.ne.s32.totalorder %s2225_s6, %s1688_s22  ;;  %p1695_p12 = scmp.lt.u32.totalorder %s1688_s22, %s2225_s6 }
  0x71   : > { %p1691_p3 = pnand %p1689_p1, %p1938_p8 }
  0x73   : > { %p1692_p11 = pneg %p1691_p3 }
  0x75   : > { %p1697_p13 = pnand %p1695_p12, %p1692_p11 }
  0x77   : > { %1700 = shalt.err (!%p1697_p13)
}
  0x78   : > { %s1701_s15 = scalar_lea.vmem %s299_s24, 1024  ;;  %p1709_p7 = scmp.lt.s32.totalorder %s299_s24, %s299_s24 }
  0x79   : > { %p1702_p0 = scmp.ne.s32.totalorder %s299_s24, %s1701_s15  ;;  %p1710_p9 = scmp.lt.s32.totalorder %s1701_s15, %s1701_s15 }
  0x7b   : > { %p1704_p2 = pnand %p1702_p0, %p1938_p8  ;;  %p1711_p4 = por %p1710_p9, %p1709_p7 }
  0x7d   : > { %p1705_p5 = pneg %p1704_p2 }
  0x7f   : > { %p1712_p10 = pnand %p1711_p4, %p1705_p5 }
  0x81   : > { %1715 = shalt.err (!%p1712_p10)
}
  0x82   : > { %1423 = dma.hbm_to_vmem [thread:$0]  (!%p1922_p6), %s2225_s6, 1024, %s299_s24, [#allocation12], %s2241_s16, %s2241_s16, %s2240_s14  }
  0x83   : > { %s1214_s13 = sadd.s32 4294967294, %s1824_s30   ;;  %s2048_s23 = sadd.s32 1, %s1824_s30  }
  0x84   : > { %s34_s1 = sadd.s32 1, %s1820_s29  ;;  %s31_s18 = ssub.s32 %s1824_s30, %s2048_s23 }
  0x85   : > { %p41_p8 = scmp.ne.s32.totalorder %s1820_s29, %s1816_s28  ;;  %p32_p1 = scmp.eq.s32.totalorder %s31_s18, 0 }
  0x86   : > { %p42_p3 = scmp.eq.s32.totalorder %s1824_s30, 0  ;;  %p47_p11 = scmp.ne.s32.totalorder %s1816_s28, %s1812_s27 }
  0x87   : > { %p218_p12 = scmp.eq.s32.totalorder %s1906_s11, 1  ;;  %p2242_p0 = scmp.eq.s32.totalorder %s1906_s11, 0 }
  0x88   : > { %s2060_s20 = scalar_select %p32_p1, %s1820_s29, %s34_s1  }
  0x89   : > { %p43_p13 = por %p42_p3, %p41_p8  ;;  %p2064_p2 = por %p2242_p0, %p47_p11 }
  0x8a   : > { %p2068_p6 = por %p218_p12, %p41_p8  ;;  %p224_p5 = scmp.eq.s32.totalorder %s1214_s13, 1 }
  0x8b   : > { %p1437_p7 = scmp.lt.s32.totalorder %s1824_s30, 2  ;;  %s315_s14 = sand.u32 1, %s1820_s29  }
  0x8c   : > { %s2244_s24 = scalar_select %p2068_p6, 1, 0 }
  0x8d   : > { %p2074_p9 = por %p224_p5, %p47_p11  ;;  %s1222_s22 = sshll.u32 %s315_s14, 3 }
  0x8e   : > { %s1223_s25 = sshll.u32 %s1824_s30, 7  ;;  %s319_s15 = scalar_lea.vmem [#allocation2], %s1222_s22 }
  0x8f   : > { %s2245_s16 = scalar_select %p2074_p9, 1, 0 }
  0x90   : > { %s2082_s19 = scalar_lea.hbm %s2219_s0, %s1223_s25  ;;  %s326_s21 = sshll.u32 %s319_s15, 4  ;;  %s2088_s21 = int_to_ptr.vmem [resolvable:$true] %s326_s21 }
  0x91   : > { %p2084_p4 = pnand %p1437_p7, %p43_p13  ;;  %s316_s13 = scalar_lea.sflag [#allocation3], %s315_s14 }
  0x92   : > { %s1716_s1 = scalar_lea.hbm %s2082_s19, 128  ;;  %s1721_s25 = scalar_lea.hbm %s2219_s0, 256 }
  0x93   : > { %p1717_p10 = scmp.ne.s32.totalorder %s2082_s19, %s1716_s1  ;;  %p1718_p8 = pneg %p2084_p4 }
  0x94   : > { %p1722_p11 = scmp.lt.u32.totalorder %s2082_s19, %s2219_s0  ;;  %p1723_p12 = scmp.lt.u32.totalorder %s1721_s25, %s1716_s1 }
  0x95   : > { %p1719_p1 = pnand %p1718_p8, %p1717_p10  ;;  %p1725_p0 = scmp.lt.u32.totalorder %s1716_s1, %s2082_s19 }
  0x96   : > { %p1724_p13 = por %p1723_p12, %p1722_p11 }
  0x97   : > { %p1720_p3 = pneg %p1719_p1 }
  0x98   : > { %p1726_p5 = por %p1725_p0, %p1724_p13 }
  0x9a   : > { %p1727_p7 = pnand %p1726_p5, %p1720_p3 }
  0x9c   : > { %1730 = shalt.err (!%p1727_p7)
}
  0x9d   : > { %s1731_s14 = scalar_lea.vmem %s2088_s21, 128  ;;  %s1835_s15 = smov [#allocation2]  }
  0x9e   : > { %p1732_p10 = scmp.ne.s32.totalorder %s2088_s21, %s1731_s14  ;;  %s1736_s18 = sshll.u32 %s1835_s15, 4  ;;  %s1737_s18 = int_to_ptr.vmem [resolvable:$false] %s1736_s18 }
  0x9f   : > { %s1738_s22 = scalar_lea.vmem %s1737_s18, 256  ;;  %p1739_p6 = scmp.lt.s32.totalorder %s2088_s21, %s1737_s18 }
  0xa0   : > { %p1734_p1 = pnand %p1732_p10, %p1718_p8  ;;  %p1740_p11 = scmp.lt.s32.totalorder %s1738_s22, %s1731_s14 }
  0xa2   : > { %p1735_p9 = pneg %p1734_p1  ;;  %p1741_p12 = por %p1740_p11, %p1739_p6 }
  0xa4   : > { %p1742_p13 = pnand %p1741_p12, %p1735_p9 }
  0xa6   : > { %1745 = shalt.err (!%p1742_p13)
}
  0xa7   : > { %1427 = dma.hbm_to_vmem [thread:$0]  (!%p2084_p4), %s2082_s19, 128, %s2088_s21, %s316_s13  }
  0xa8   : > { %p2247_p3 = scmp.ne.s32.totalorder %s2236_s12, 0 }
  0xa9   : > { %s2118_s1 = sand.u32 (!%p2247_p3), 1, %s1816_s28  }
  0xaa   : > { %335 = sbr.rel (%p2247_p3) target bundleno = 1127 (0x467), region = 52  ;;  %s1225_s25 = sshll.u32 (!%p2247_p3), %s2118_s1, 3 }
  0xab   : > { %s338_s26 = scalar_lea.sflag (!%p2247_p3), [#allocation3], %s2118_s1  ;;  %s2124_s10 = scalar_lea.vmem (!%p2247_p3), [#allocation2], %s1225_s25 }
  0xb1   : > { %1791 = dma.done.wait (%p2064_p2), %s338_s26, 128  }
  0xb2   : > { %1793 = vsyncadd (%p2064_p2), %s338_s26, 4294967168  ;;  %p2248_p6 = scmp.eq.s32.totalorder %s1906_s11, 0 }
  0xb4   : > { %1795 = dma.done.wait (%p2248_p6), [#allocation6], 3072   ;;  %p2249_p9 = pmov %p2248_p6 }
  0xb5   : > { %p2250_p4 = pmov %p2248_p6 }
  0xb6   : > { %1797 = vsyncadd (%p2249_p9), [#allocation6], 4294964224 }
  0xb7   : > { %1799 = dma.done.wait (%p2250_p4), [#allocation9], 4096   ;;  %p2251_p8 = pmov %p2250_p4 }
  0xb8   : > { %p2252_p0 = pmov %p2250_p4 }
  0xb9   : > { %1801 = vsyncadd (%p2251_p8), [#allocation9], 4294963200 }
  0xba   : > { %1803 = dma.done.wait (%p2252_p0), [#allocation12], 1024   ;;  %p2253_p5 = pmov %p2252_p0 }
  0xbb   : > { %v1836_v0 = vmov 0.0   ;;  %vm1837_vm0 = vmmov 0   ;;  %v1488_v1 = vld [vmem:[#allocation5] sm:$0xff]   ;;  %v1489_v2 = vld [vmem:[#allocation5 + $0x8] sm:$0xff]   ;;  %v1490_v3 = vld [vmem:[#allocation5 + $0x10] sm:$0xff]   ;;  %v1838_v43 = vmov 0  }
  0xbc   : > { %1805 = vsyncadd (%p2253_p5), [#allocation12], 4294966272  ;;  %1344 = vmatprep.subr.bf16.mxu0 %v1836_v0  ;;  %1360 = vmatprep.mubr.msk.bf16.mxu0 %vm1837_vm0, %v1836_v0  ;;  %v1496_v4 = vld [vmem:[#allocation7 + $0x4] ss:$8 sps:$4 sm:$0xff]   ;;  %v1491_v5 = vld [vmem:[#allocation5 + $0x18] sm:$0xff]   ;;  %s1301_s17 = sshll.u32 %s1906_s11, 7 }
  0xbd   : > { %1345 = vmatpush3.bf16.msra.mxu0 %v1488_v1  ;;  %v1501_v6 = vld [vmem:[#allocation7] ss:$8 sps:$4 sm:$0xff]   ;;  %605 = vmatprep.subr.bf16.mxu1 %v1496_v4  ;;  %v1502_v7 = vld [vmem:[#allocation7 + $0x14] ss:$8 sps:$4 sm:$0xff]   ;;  %v1507_v9 = vld [vmem:[#allocation7 + $0x10] ss:$8 sps:$4 sm:$0xff]   ;;  %s2175_s22 = scalar_lea.hbm %s2227_s8, %s1301_s17 }
  0xbe   : > { %1346 = vmatprep.subr.bf16.mxu0 %v1836_v0  ;;  %606 = vmatpush1.bf16.msra.mxu1 %v1501_v6  ;;  %v1492_v8 = vld [vmem:[#allocation5 + $0x20] sm:$0xff]   ;;  %v1514_v12 = vld [vmem:[#allocation7 + $0x34] ss:$8 sps:$4 sm:$0xff]   ;;  %v1493_v13 = vld [vmem:[#allocation5 + $0x28] sm:$0xff]   ;;  %s393_s13 = scalar_lea.vmem [#allocation13], %s1225_s25  ;;  %s1083_s11 = scalar_lea.sflag [#allocation4], %s2118_s1 }
  0xbf   : > { %607 = vmatprep.subr.bf16.mxu1 %v1502_v7  ;;  %v1508_v10 = vld [vmem:[#allocation7 + $0x24] ss:$8 sps:$4 sm:$0xff]   ;;  %v1513_v11 = vld [vmem:[#allocation7 + $0x20] ss:$8 sps:$4 sm:$0xff]   ;;  %v1519_v14 = vld [vmem:[#allocation7 + $0x30] ss:$8 sps:$4 sm:$0xff]   ;;  %637 = vmatprep.mubr.bf16.mxu1 %v1838_v43 }
  0xc0   : > { %v1520_v15 = vld [vmem:[#allocation7 + $0x44] ss:$8 sps:$4 sm:$0xff]   ;;  %v1494_v16 = vld [vmem:[#allocation5 + $0x30] sm:$0xff]   ;;  %v1495_v17 = vld [vmem:[#allocation5 + $0x38] sm:$0xff]   ;;  %s1096_s14 = sshll.u32 %s393_s13, 4  ;;  %p2254_p7 = scmp.ne.s32.totalorder %s2244_s24, 0  ;;  %s2177_s14 = int_to_ptr.vmem [resolvable:$true] %s1096_s14 }
  0xc1   : > { %1347 = vmatpush3.bf16.msra.mxu0 %v1489_v2  ;;  %v1525_v18 = vld [vmem:[#allocation7 + $0x40] ss:$8 sps:$4 sm:$0xff]   ;;  %v1526_v19 = vld [vmem:[#allocation7 + $0x54] ss:$8 sps:$4 sm:$0xff]   ;;  %v1500_v21 = vld [vmem:[#allocation8 + $0x4] ss:$8 sps:$4 sm:$0xff]  }
  0xc2   : > { %1348 = vmatprep.subr.bf16.mxu0 %v1836_v0  ;;  %608 = vmatpush1.bf16.msra.mxu1 %v1507_v9  ;;  %v395_v20 = vld [vmem:[%s2124_s10] sm:$0xff]  ;;  %v1532_v23 = vld [vmem:[#allocation7 + $0x64] ss:$8 sps:$4 sm:$0xff]   ;;  %v1498_v24 = vld [vmem:[#allocation8] ss:$8 sps:$4 sm:$0xff]   ;;  %s1746_s26 = scalar_lea.vmem %s2177_s14, 128 }
  0xc3   : > { %609 = vmatprep.subr.bf16.mxu1 %v1508_v10  ;;  %v1531_v22 = vld [vmem:[#allocation7 + $0x50] ss:$8 sps:$4 sm:$0xff]   ;;  %v396_v25 = vpack.c.bf16 %v395_v20, %v395_v20  ;;  %v1506_v26 = vld [vmem:[#allocation8 + $0x14] ss:$8 sps:$4 sm:$0xff]   ;;  %v1537_v27 = vld [vmem:[#allocation7 + $0x60] ss:$8 sps:$4 sm:$0xff]   ;;  %p1747_p2 = scmp.ne.s32.totalorder %s2177_s14, %s1746_s26 }
  0xc4   : > { %v1504_v28 = vld [vmem:[#allocation8 + $0x10] ss:$8 sps:$4 sm:$0xff]   ;;  %v1512_v29 = vld [vmem:[#allocation8 + $0x24] ss:$8 sps:$4 sm:$0xff]   ;;  %v1510_v30 = vld [vmem:[#allocation8 + $0x20] ss:$8 sps:$4 sm:$0xff]  }
  0xc5   : > { %1349 = vmatpush3.bf16.msra.mxu0 %v1490_v3  ;;  %v1518_v31 = vld [vmem:[#allocation8 + $0x34] ss:$8 sps:$4 sm:$0xff]   ;;  %v1516_v32 = vld [vmem:[#allocation8 + $0x30] ss:$8 sps:$4 sm:$0xff]   ;;  %v1524_v33 = vld [vmem:[#allocation8 + $0x44] ss:$8 sps:$4 sm:$0xff]   ;;  %p1748_p10 = pnand %p1747_p2, %p2254_p7 }
  0xc6   : > { %1350 = vmatprep.subr.bf16.mxu0 %v1836_v0  ;;  %610 = vmatpush1.bf16.msra.mxu1 %v1513_v11  ;;  %v1522_v34 = vld [vmem:[#allocation8 + $0x40] ss:$8 sps:$4 sm:$0xff]   ;;  %v1530_v35 = vld [vmem:[#allocation8 + $0x54] ss:$8 sps:$4 sm:$0xff]   ;;  %v1528_v36 = vld [vmem:[#allocation8 + $0x50] ss:$8 sps:$4 sm:$0xff]  }
  0xc7   : > { %611 = vmatprep.subr.bf16.mxu1 %v1514_v12  ;;  %v1536_v37 = vld [vmem:[#allocation8 + $0x64] ss:$8 sps:$4 sm:$0xff]   ;;  %v1534_v38 = vld [vmem:[#allocation8 + $0x60] ss:$8 sps:$4 sm:$0xff]   ;;  %v1538_v39 = vld [vmem:[#allocation7 + $0x74] ss:$8 sps:$4 sm:$0xff]   ;;  %p1749_p1 = pneg %p1748_p10 }
  0xc8   : > { %v1542_v40 = vld [vmem:[#allocation8 + $0x74] ss:$8 sps:$4 sm:$0xff]   ;;  %v1540_v41 = vld [vmem:[#allocation8 + $0x70] ss:$8 sps:$4 sm:$0xff]   ;;  %v1544_v51 = vld [vmem:[#allocation10 + $0x40] sm:$0xff]   ;;  %s1839_s25 = smov [#allocation13]  }
  0xc9   : > { %1351 = vmatpush3.bf16.msra.mxu0 %v1491_v5  ;;  %v1543_v42 = vld [vmem:[#allocation7 + $0x70] ss:$8 sps:$4 sm:$0xff]   ;;  %v1545_v52 = vld [vmem:[#allocation10] sm:$0xff]   ;;  %v1546_v53 = vld [vmem:[#allocation10 + $0x48] sm:$0xff]   ;;  %s1750_s10 = sshll.u32 %s1839_s25, 4  ;;  %s1751_s10 = int_to_ptr.vmem [resolvable:$false] %s1750_s10 }
  0xca   : > { %1352 = vmatprep.subr.bf16.mxu0 %v1836_v0  ;;  %612 = vmatpush1.bf16.msra.mxu1 %v1519_v14  ;;  %v1232_v44 = vld [vmem:[%s2221_s2] ss:$0 sm:$0xff]  ;;  %v1547_v54 = vld [vmem:[#allocation10 + $0x8] sm:$0xff]   ;;  %v1550_v57 = vld [vmem:[#allocation10 + $0x58] sm:$0xff]   ;;  %s1752_s12 = scalar_lea.vmem %s1751_s10, 256  ;;  %p1753_p11 = scmp.lt.s32.totalorder %s2177_s14, %s1751_s10 }
  0xcb   : > { %613 = vmatprep.subr.bf16.mxu1 %v1520_v15  ;;  %v1548_v55 = vld [vmem:[#allocation10 + $0x50] sm:$0xff]   ;;  %v1551_v58 = vld [vmem:[#allocation10 + $0x18] sm:$0xff]   ;;  %v1552_v59 = vld [vmem:[#allocation10 + $0x60] sm:$0xff]   ;;  %p1754_p12 = scmp.lt.s32.totalorder %s1752_s12, %s1746_s26 }
  0xcc   : > { %v1549_v56 = vld [vmem:[#allocation10 + $0x10] sm:$0xff]   ;;  %v1553_v60 = vld [vmem:[#allocation10 + $0x20] sm:$0xff]   ;;  %v1554_v61 = vld [vmem:[#allocation10 + $0x68] sm:$0xff]  }
  0xcd   : > { %1353 = vmatpush3.bf16.msra.mxu0 %v1492_v8  ;;  %v1555_v62 = vld [vmem:[#allocation10 + $0x28] sm:$0xff]   ;;  %v1556_v63 = vld [vmem:[#allocation10 + $0x70] sm:$0xff]   ;;  %v1558_v2 = vld [vmem:[#allocation10 + $0x78] sm:$0xff]   ;;  %p1755_p13 = por %p1754_p12, %p1753_p11 }
  0xce   : > { %1354 = vmatprep.subr.bf16.mxu0 %v1836_v0  ;;  %614 = vmatpush1.bf16.msra.mxu1 %v1525_v18  ;;  %v1557_v1 = vld [vmem:[#allocation10 + $0x30] sm:$0xff]   ;;  %v1559_v3 = vld [vmem:[#allocation10 + $0x38] sm:$0xff]   ;;  %v1560_v4 = vld [vmem:[#allocation11] sm:$0xff]  }
  0xcf   : > { %615 = vmatprep.subr.bf16.mxu1 %v1526_v19  ;;  %v1561_v5 = vld [vmem:[#allocation11 + $0x8] sm:$0xff]   ;;  %v1562_v6 = vld [vmem:[#allocation11 + $0x10] sm:$0xff]   ;;  %v1563_v7 = vld [vmem:[#allocation11 + $0x18] sm:$0xff]   ;;  %p1756_p3 = pnand %p1755_p13, %p1749_p1 }
  0xd0   : > { %v1564_v8 = vld [vmem:[#allocation11 + $0x20] sm:$0xff]   ;;  %v1565_v9 = vld [vmem:[#allocation11 + $0x28] sm:$0xff]   ;;  %v1566_v10 = vld [vmem:[#allocation11 + $0x30] sm:$0xff]  }
  0xd1   : > { %1355 = vmatpush3.bf16.msra.mxu0 %v1493_v13 }
  0xd2   : > { %1356 = vmatprep.subr.bf16.mxu0 %v1836_v0  ;;  %616 = vmatpush1.bf16.msra.mxu1 %v1531_v22 }
  0xd3   : > { %617 = vmatprep.subr.bf16.mxu1 %v1532_v23 }
  0xd5   : > { %1357 = vmatpush3.bf16.msra.mxu0 %v1494_v16 }
  0xd6   : > { %1358 = vmatprep.subr.bf16.mxu0 %v1836_v0  ;;  %618 = vmatpush1.bf16.msra.mxu1 %v1537_v27 }
  0xd7   : > { %619 = vmatprep.subr.bf16.mxu1 %v1538_v39  ;;  %v1291_v39 = vld [vmem:[%s2226_s7] ss:$0 sm:$0xff] }
  0xd9   : > { %1359 = vmatpush3.bf16.msra.mxu0 %v1495_v17 }
  0xda   : > { %742 = vmatprep.subr.bf16.mxu0 %v1500_v21  ;;  %620 = vmatpush1.bf16.msra.mxu1 %v1543_v42 }
  0xdb   : > { %1313 = vmatprep.subr.bf16.mxu1 %v1544_v51 }
  0xdc   : > { %1361 = vmatmul.mubr.bf16.vlgmr.msra.gmra.mrb[0].mxu0 %v396_v25 }
  0xdd   : > { %743 = vmatpush1.bf16.msra.mxu0 %v1498_v24  ;;  %774 = vmatprep.mubr.bf16.mxu0 %v1838_v43 }
  0xde   : > { %744 = vmatprep.subr.bf16.mxu0 %v1506_v26 }
  0xe1   : > { %745 = vmatpush1.bf16.msra.mxu0 %v1504_v28 }
  0xe2   : > { %746 = vmatprep.subr.bf16.mxu0 %v1512_v29 }
  0xe5   : > { %747 = vmatpush1.bf16.msra.mxu0 %v1510_v30 }
  0xe6   : > { %748 = vmatprep.subr.bf16.mxu0 %v1518_v31 }
  0xe9   : > { %749 = vmatpush1.bf16.msra.mxu0 %v1516_v32  ;;  %v1567_v32 = vld [vmem:[#allocation11 + $0x38] sm:$0xff]  }
  0xea   : > { %750 = vmatprep.subr.bf16.mxu0 %v1524_v33 }
  0xed   : > { %751 = vmatpush1.bf16.msra.mxu0 %v1522_v34 }
  0xee   : > { %752 = vmatprep.subr.bf16.mxu0 %v1530_v35 }
  0xf1   : > { %753 = vmatpush1.bf16.msra.mxu0 %v1528_v36 }
  0xf2   : > { %754 = vmatprep.subr.bf16.mxu0 %v1536_v37 }
  0xf5   : > { %755 = vmatpush1.bf16.msra.mxu0 %v1534_v38 }
  0xf6   : > { %756 = vmatprep.subr.bf16.mxu0 %v1542_v40 }
  0xf9   : > { %757 = vmatpush1.bf16.msra.mxu0 %v1540_v41 }
  0xfa   : > { %1364 = vmatprep.subr.bf16.mxu0 %v1836_v0 }
 0x1af   : > { %v502_v45 = vpop.f32.mrb[0].mxu0 }
 0x1b0   : > { %v503_v46 = vadd.f32 %v1232_v44, %v502_v45  ;;  %v1362_v47 = vpop.f32.mrb[1].mxu0 }
 0x1b1   : > { %v505_v48 = vpop.f32.mrb[2].mxu0 }
 0x1b2   : > { %v508_v49 = vpack.c.bf16 %v503_v46, %v503_v46  ;;  %v1363_v50 = vpop.f32.mrb[3].mxu0 }
 0x1b4   : > { %638 = vmatmul.mubr.bf16.vlgmr.msra.gmra.mrb[0].mxu1 %v508_v49  ;;  %775 = vmatmul.mubr.bf16.vlgmr.msra.gmra.mrb[4].mxu0 %v508_v49 }
 0x1b5   : > { %1380 = vmatprep.mubr.msk.bf16.mxu0 %vm1837_vm0, %v1836_v0  ;;  %1314 = vmatpush3.bf16.msra.mxu1 %v1545_v52 }
 0x1b6   : > { %1315 = vmatprep.subr.bf16.mxu1 %v1546_v53  ;;  %1365 = vmatpush3.bf16.msra.mxu0 %v1560_v4 }
 0x1b7   : > { %1366 = vmatprep.subr.bf16.mxu0 %v1836_v0 }
 0x1b9   : > { %1316 = vmatpush3.bf16.msra.mxu1 %v1547_v54 }
 0x1ba   : > { %1317 = vmatprep.subr.bf16.mxu1 %v1548_v55  ;;  %1367 = vmatpush3.bf16.msra.mxu0 %v1561_v5 }
 0x1bb   : > { %1368 = vmatprep.subr.bf16.mxu0 %v1836_v0 }
 0x1bd   : > { %1318 = vmatpush3.bf16.msra.mxu1 %v1549_v56 }
 0x1be   : > { %1319 = vmatprep.subr.bf16.mxu1 %v1550_v57  ;;  %1369 = vmatpush3.bf16.msra.mxu0 %v1562_v6 }
 0x1bf   : > { %1370 = vmatprep.subr.bf16.mxu0 %v1836_v0 }
 0x1c1   : > { %1320 = vmatpush3.bf16.msra.mxu1 %v1551_v58 }
 0x1c2   : > { %1321 = vmatprep.subr.bf16.mxu1 %v1552_v59  ;;  %1371 = vmatpush3.bf16.msra.mxu0 %v1563_v7 }
 0x1c3   : > { %1372 = vmatprep.subr.bf16.mxu0 %v1836_v0 }
 0x1c5   : > { %1322 = vmatpush3.bf16.msra.mxu1 %v1553_v60 }
 0x1c6   : > { %1323 = vmatprep.subr.bf16.mxu1 %v1554_v61  ;;  %1373 = vmatpush3.bf16.msra.mxu0 %v1564_v8 }
 0x1c7   : > { %1374 = vmatprep.subr.bf16.mxu0 %v1836_v0 }
 0x1c9   : > { %1324 = vmatpush3.bf16.msra.mxu1 %v1555_v62 }
 0x1ca   : > { %1325 = vmatprep.subr.bf16.mxu1 %v1556_v63  ;;  %1375 = vmatpush3.bf16.msra.mxu0 %v1565_v9 }
 0x1cb   : > { %1376 = vmatprep.subr.bf16.mxu0 %v1836_v0 }
 0x1cd   : > { %1326 = vmatpush3.bf16.msra.mxu1 %v1557_v1 }
 0x1ce   : > { %1327 = vmatprep.subr.bf16.mxu1 %v1558_v2  ;;  %1377 = vmatpush3.bf16.msra.mxu0 %v1566_v10 }
 0x1cf   : > { %1378 = vmatprep.subr.bf16.mxu0 %v1836_v0 }
 0x1d1   : > { %1328 = vmatpush3.bf16.msra.mxu1 %v1559_v3 }
 0x1d2   : > { %1379 = vmatpush3.bf16.msra.mxu0 %v1567_v32 }
 0x287   : > { %v639_v11 = vpop.f32.mrb[0].mxu1  ;;  %v776_v12 = vpop.f32.mrb[4].mxu0 }
 0x288   : > { %v1273_v13 = vmul.f32 -1.442695, %v639_v11  ;;  %v641_v14 = vpop.f32.mrb[1].mxu1  ;;  %v778_v15 = vpop.f32.mrb[5].mxu0 }
 0x289   : > { %v1274_v16 = vmul.f32 -1.442695, %v641_v14  ;;  %v643_v17 = vpop.f32.mrb[2].mxu1  ;;  %v780_v18 = vpop.f32.mrb[6].mxu0 }
 0x28a   : > { %1568 = vpow2.f32 %v1273_v13  ;;  %v644_v19 = vpop.f32.mrb[3].mxu1  ;;  %v781_v20 = vpop.f32.mrb[7].mxu0 }
 0x28b   : > { %1570 = vpow2.f32 %v1274_v16 }
 0x294   : > { %v1569_v21 = vpop.eup %1568 }
 0x295   : > { %v1571_v22 = vpop.eup %1570  ;;  %v789_v23 = vadd.f32 1.0, %v1569_v21 }
 0x296   : > { %v790_v24 = vadd.f32 1.0, %v1571_v22 }
 0x297   : > { %1572 = vrcp.f32 %v789_v23 }
 0x298   : > { %1574 = vrcp.f32 %v790_v24 }
 0x2a1   : > { %v1573_v25 = vpop.eup %1572 }
 0x2a2   : > { %v1575_v0 = vpop.eup %1574  ;;  %v795_v26 = vmul.f32 %v1573_v25, %v639_v11 }
 0x2a3   : > { %v796_v27 = vmul.f32 %v1575_v0, %v641_v14 }
 0x2a4   : > { %v797_v28 = vmul.f32 %v795_v26, %v776_v12 }
 0x2a5   : > { %v798_v29 = vmul.f32 %v796_v27, %v778_v15 }
 0x2a6   : > { %v799_v31 = vpack.c.bf16 %v797_v28, %v797_v28 }
 0x2a7   : > { %v800_v30 = vpack.c.bf16 %v798_v29, %v798_v29 }
 0x2a9   : > { %961 = vmatprep.mubr.bf16.mxu1 %v800_v30 }
 0x2aa   : > { %962 = vmatmul.mubr.bf16.vlgmr.msra.gmra.mrb[4].mxu1 %v799_v31 }
 0x37d   : > { %v1329_v33 = vpop.f32.mrb[4].mxu1 }
 0x37e   : > { %v1330_v34 = vpop.f32.mrb[5].mxu1 }
 0x37f   : > { %v1331_v35 = vadd.f32 %v1330_v34, %v1329_v33  ;;  %v1332_v36 = vpop.f32.mrb[6].mxu1 }
 0x380   : > { %v1333_v37 = vpop.f32.mrb[7].mxu1 }
 0x381   : > { %v969_v38 = vpack.c.bf16 %v1331_v35, %v1331_v35 }
 0x383   : > { %1381 = vmatmul.mubr.bf16.vlgmr.msra.gmra.mrb[8].mxu0 %v969_v38 }
 0x456   : > { %v1075_v40 = vpop.f32.mrb[8].mxu0 }
 0x457   : > { %v1076_v41 = vadd.f32 %v1291_v39, %v1075_v40  ;;  %v1382_v42 = vpop.f32.mrb[9].mxu0 }
 0x458   : > { %v1078_v43 = vpop.f32.mrb[10].mxu0 }
 0x459   : > { %1081 = vst [vmem:[%s393_s13] sm:$0xff] %v1076_v41  ;;  %v1383_v44 = vpop.f32.mrb[11].mxu0 }
 0x45a   : > { %1759 = shalt.err (!%p1756_p3)
}
 0x45b   : > { %s1760_s1 = scalar_lea.hbm %s2175_s22, 128  ;;  %s1764_s21 = scalar_lea.hbm %s2227_s8, 256 }
 0x45c   : > { %p1761_p6 = scmp.ne.s32.totalorder %s2175_s22, %s1760_s1  ;;  %p1765_p8 = scmp.lt.u32.totalorder %s2175_s22, %s2227_s8 }
 0x45d   : > { %p1766_p0 = scmp.lt.u32.totalorder %s1764_s21, %s1760_s1  ;;  %p1768_p2 = scmp.lt.u32.totalorder %s1760_s1, %s2175_s22 }
 0x45e   : > { %p1762_p9 = pnand %p1761_p6, %p2254_p7 }
 0x45f   : > { %p1767_p5 = por %p1766_p0, %p1765_p8 }
 0x460   : > { %p1763_p4 = pneg %p1762_p9 }
 0x461   : > { %p1769_p10 = por %p1768_p2, %p1767_p5 }
 0x463   : > { %p1770_p1 = pnand %p1769_p10, %p1763_p4 }
 0x465   : > { %1773 = shalt.err (!%p1770_p1)
}
 0x466   : > { %1406 = dma.vmem_to_hbm [thread:$0]  (%p2254_p7), %s2177_s14, 128, %s2175_s22, %s1083_s11  }
 0x467 PF: > { %s1108_s15 = sand.u32 1, %s1812_s27   ;;  %p2255_p11 = scmp.ne.s32.totalorder %s2245_s16, 0 }
 0x468   : > { %p2256_p12 = scmp.ge.s32.totalorder %s1824_s30, 2  ;;  %s1109_s18 = scalar_lea.sflag [#allocation4], %s1108_s15 }
 0x46a   : > { %p1429_p13 = pnand %p2256_p12, %p2255_p11 }
 0x46c   : > { %1807 = dma.done.wait (!%p1429_p13), %s1109_s18, 128  }
 0x46d   : > { %1809 = vsyncadd (!%p1429_p13), %s1109_s18, 4294967168  ;;  %p24_p3 = scmp.ge.s32.totalorder %s2048_s23, 4   ;;  %s2257_s27 = smov %s1816_s28 }
 0x46e   : > { %s2258_s28 = smov %s1820_s29  ;;  %s2259_s29 = smov %s2060_s20 }
 0x46f   : > { %s2260_s30 = smov %s2048_s23  ;;  %26 = sbr.rel (!%p24_p3) target bundleno = 10 (0xa), region = 117 }
 0x476   :  { %1114 = vsyncpa [#allocation3], 1 }
 0x477   :  { %1116 = vsyncpa [#allocation3 + $0x1], 1 }
 0x478   :  { %1117 = vsyncpa [#allocation6], 1 }
 0x479   :  { %1118 = vsyncpa [#allocation9], 1 }
 0x47a   :  { %1119 = vsyncpa [#allocation12], 1 }
 0x47b   :  { %1120 = vsyncpa [#allocation4], 1 }
 0x47c   :  { %1122 = vsyncpa [#allocation4 + $0x1], 1 }

</bundles_post_ra>
